<compile_context>
chip_gen: v7x
topology: tpu7x:2x2x1
jax: 0.10.0
libtpu: 0.0.40
codegen_flags: <defaults>
</compile_context>

<pallas_src>
import math

import jax
import jax.numpy as jnp
from jax.experimental import pallas as pl
from jax.experimental.pallas import tpu as pltpu


def _round_up(x, m):
    return (x + m - 1) // m * m


def time_embedding_kernel(t_ref,        # SMEM (B_p,) int32
                          table_ref,    # HBM  (T, dmod_p) f32  (raw ref, manual DMA)
                          w1_ref,       # VMEM (dmod_p, dim_p)
                          b1_ref,       # VMEM (1, dim_p)
                          w2_ref,       # VMEM (dim_p, dim_p)
                          b2_ref,       # VMEM (1, dim_p)
                          out_ref,      # VMEM (B_p, dim_p)
                          emb_ref,      # VMEM scratch (B_p, dmod_p)
                          sem_ref):     # DMA semaphores (B_p,)
    B = out_ref.shape[0]
    T = table_ref.shape[0]

    # --- embedding lookup: DMA-gather only the needed rows from HBM ---
    # B is small and static, so both loops fully unroll; all row DMAs are issued
    # back-to-back before the single wait pass.
    copies = []
    for b in range(B):
        # Defensive clamp: PyTorch's table[t] would raise on OOB; here we clamp instead
        # of silently reading arbitrary HBM. (Padded batch rows carry index 0 -> valid.)
        row = jnp.clip(t_ref[b], 0, T - 1)
        cp = pltpu.make_async_copy(table_ref.at[row], emb_ref.at[b], sem_ref.at[b])
        cp.start()
        copies.append(cp)
    for cp in copies:
        cp.wait()

    emb = emb_ref[...]                                              # (B_p, dmod_p) f32

    # --- Linear(d_model, dim) + Swish ---
    h = jnp.dot(emb, w1_ref[...],
                preferred_element_type=jnp.float32) + b1_ref[...]   # (B_p, dim_p)
    # Swish: x * sigmoid(x); exp goes to the EUP, reciprocal kept exact (approx=False)
    # so the result matches the reference to tight tolerance.
    h = h * pl.reciprocal(1.0 + jnp.exp(-h), approx=False)

    # --- Linear(dim, dim) ---
    out_ref[...] = jnp.dot(h, w2_ref[...],
                           preferred_element_type=jnp.float32) + b2_ref[...]


def time_embedding(t, table, w1, b1, w2, b2):
    """t: (B,) int indices into [0, T). Returns (B, dim) float32."""
    B = t.shape[0]
    T, d_model = table.shape
    dim = w2.shape[1]

    B_p = _round_up(B, 8)           # sublane-aligned batch
    dim_p = _round_up(dim, 128)     # lane-dense feature dim (unmasked stores)
    dmod_p = _round_up(d_model, 8)  # aligned contraction dim / scratch rows

    t_p = jnp.pad(t.astype(jnp.int32), (0, B_p - B))                       # pad rows -> index 0
    table_p = table if dmod_p == d_model else jnp.pad(
        table, ((0, 0), (0, dmod_p - d_model)))
    w1p = jnp.pad(w1, ((0, dmod_p - d_model), (0, dim_p - dim)))
    b1p = jnp.pad(b1, (0, dim_p - dim)).reshape(1, dim_p)
    w2p = jnp.pad(w2, ((0, dim_p - dim), (0, dim_p - dim)))
    b2p = jnp.pad(b2, (0, dim_p - dim)).reshape(1, dim_p)

    vmem = pl.BlockSpec(memory_space=pltpu.MemorySpace.VMEM)
    out_p = pl.pallas_call(
        time_embedding_kernel,
        out_shape=jax.ShapeDtypeStruct((B_p, dim_p), jnp.float32),
        in_specs=[
            pl.BlockSpec(memory_space=pltpu.MemorySpace.SMEM),   # t     -> SMEM scalars
            pl.BlockSpec(memory_space=pl.ANY),                   # table -> stays in HBM
            vmem,                                                # w1
            vmem,                                                # b1
            vmem,                                                # w2
            vmem,                                                # b2
        ],
        out_specs=vmem,
        scratch_shapes=[
            pltpu.VMEM((B_p, dmod_p), jnp.float32),              # gathered embedding rows
            pltpu.SemaphoreType.DMA((B_p,)),                     # one sem per row DMA
        ],
        cost_estimate=pl.CostEstimate(
            flops=2 * B_p * (dmod_p * dim_p + dim_p * dim_p),
            transcendentals=B_p * dim_p,
            bytes_accessed=4 * (B_p + B_p * dmod_p                 # indices + gathered rows
                                + dmod_p * dim_p + dim_p           # w1, b1
                                + dim_p * dim_p + dim_p            # w2, b2
                                + B_p * dim_p),                    # output
        ),
    )(t_p, table_p, w1p, b1p, w2p, b2p)

    return out_p[:B, :dim]


def make_sinusoidal_table(T, d_model):
    """Exactly mirrors the PyTorch __init__ construction (freeze=False => it is a
    trainable parameter, so it must remain a kernel input rather than recomputed)."""
    emb = jnp.arange(0.0, d_model, step=2.0) / d_model * math.log(10000.0)
    emb = jnp.exp(-emb)                                     # (d_model // 2,)
    pos = jnp.arange(T, dtype=jnp.float32)                  # (T,)
    emb = pos[:, None] * emb[None, :]                       # (T, d_model // 2)
    emb = jnp.stack([jnp.sin(emb), jnp.cos(emb)], axis=-1)  # (T, d_model//2, 2)
    return emb.reshape(T, d_model)                          # (T, d_model)


def init_linear(key, fan_in, fan_out):
    """PyTorch-default-style uniform init; weight stored as (in_features, out_features)."""
    kw, kb = jax.random.split(key)
    bound = 1.0 / math.sqrt(fan_in)
    w = jax.random.uniform(kw, (fan_in, fan_out), jnp.float32, -bound, bound)
    b = jax.random.uniform(kb, (fan_out,), jnp.float32, -bound, bound)
    return w, b


def reference_forward(t, table, w1, b1, w2, b2):
    emb = table[t]                                # embedding lookup
    h = emb @ w1 + b1
    h = h * jax.nn.sigmoid(h)                     # Swish
    return h @ w2 + b2


if __name__ == "__main__":
    # small, module-consistent sizes
    T, d_model, dim, B = 16, 32, 64, 8

    key = jax.random.PRNGKey(0)
    k_t, k_l1, k_l2 = jax.random.split(key, 3)

    table = make_sinusoidal_table(T, d_model)        # (T, d_model) f32
    w1, b1 = init_linear(k_l1, d_model, dim)         # Linear(d_model, dim)
    w2, b2 = init_linear(k_l2, dim, dim)             # Linear(dim, dim)

    t = jax.random.randint(k_t, (B,), 0, T, dtype=jnp.int32)

    out = time_embedding(t, table, w1, b1, w2, b2)
    out = jax.block_until_ready(out)

    ref = reference_forward(t, table, w1, b1, w2, b2)
    assert out.shape == (B, dim)
    assert jnp.allclose(out, ref, atol=1e-5, rtol=1e-5), "mismatch vs reference"

    print("KERNEL_OK")
</pallas_src>

<mosaic_0001>
module attributes {stable_mosaic.version = 11 : i64} {
  func.func @time_embedding_kernel(%arg0: memref<8xi32, #tpu.memory_space<smem>>, %arg1: memref<16x32xf32, #tpu.memory_space<any>>, %arg2: memref<32x128xf32, #tpu.memory_space<vmem>>, %arg3: memref<1x128xf32, #tpu.memory_space<vmem>>, %arg4: memref<128x128xf32, #tpu.memory_space<vmem>>, %arg5: memref<1x128xf32, #tpu.memory_space<vmem>>, %arg6: memref<8x128xf32, #tpu.memory_space<vmem>>, %arg7: memref<8x32xf32, #tpu.memory_space<vmem>>, %arg8: memref<8x!tpu.dma_semaphore, #tpu.memory_space<semaphore_mem>>) attributes {dimension_semantics = [], scalar_prefetch = 0 : i64, scratch_operands = 2 : i64, tpu.core_type = #tpu.core_type<tc>} {
    %c0 = arith.constant 0 : index
    %0 = memref.load %arg0[%c0] : memref<8xi32, #tpu.memory_space<smem>>
    %c0_i32 = arith.constant 0 : i32
    %c15_i32 = arith.constant 15 : i32
    %1 = arith.maxsi %c0_i32, %0 : i32
    %2 = arith.minsi %c15_i32, %1 : i32
    %c0_i32_0 = arith.constant 0 : i32
    %c0_i32_1 = arith.constant 0 : i32
    %c0_i32_2 = arith.constant 0 : i32
    %3 = tpu.memref_slice %arg1[%2, %c0_i32_2] : memref<16x32xf32, #tpu.memory_space<any>> -> memref<1x32xf32, #tpu.memory_space<any>>
    %4 = tpu.memref_squeeze %3 : memref<1x32xf32, #tpu.memory_space<any>> -> memref<32xf32, #tpu.memory_space<any>>
    %c0_i32_3 = arith.constant 0 : i32
    %5 = tpu.memref_slice %arg7[%c0_i32_0, %c0_i32_3] : memref<8x32xf32, #tpu.memory_space<vmem>> -> memref<1x32xf32, #tpu.memory_space<vmem>>
    %6 = tpu.memref_squeeze %5 : memref<1x32xf32, #tpu.memory_space<vmem>> -> memref<32xf32, #tpu.memory_space<vmem>>
    %7 = tpu.memref_slice %arg8[%c0_i32_1] : memref<8x!tpu.dma_semaphore, #tpu.memory_space<semaphore_mem>> -> memref<1x!tpu.dma_semaphore, #tpu.memory_space<semaphore_mem>>
    %8 = tpu.memref_squeeze %7 : memref<1x!tpu.dma_semaphore, #tpu.memory_space<semaphore_mem>> -> memref<!tpu.dma_semaphore, #tpu.memory_space<semaphore_mem>>
    tpu.enqueue_dma source(%4 : memref<32xf32, #tpu.memory_space<any>>) target(%6 : memref<32xf32, #tpu.memory_space<vmem>>) target_semaphore(%8 : memref<!tpu.dma_semaphore, #tpu.memory_space<semaphore_mem>>)
    %c1 = arith.constant 1 : index
    %9 = memref.load %arg0[%c1] : memref<8xi32, #tpu.memory_space<smem>>
    %c0_i32_4 = arith.constant 0 : i32
    %c15_i32_5 = arith.constant 15 : i32
    %10 = arith.maxsi %c0_i32_4, %9 : i32
    %11 = arith.minsi %c15_i32_5, %10 : i32
    %c1_i32 = arith.constant 1 : i32
    %c1_i32_6 = arith.constant 1 : i32
    %c0_i32_7 = arith.constant 0 : i32
    %12 = tpu.memref_slice %arg1[%11, %c0_i32_7] : memref<16x32xf32, #tpu.memory_space<any>> -> memref<1x32xf32, #tpu.memory_space<any>>
    %13 = tpu.memref_squeeze %12 : memref<1x32xf32, #tpu.memory_space<any>> -> memref<32xf32, #tpu.memory_space<any>>
    %c0_i32_8 = arith.constant 0 : i32
    %14 = tpu.memref_slice %arg7[%c1_i32, %c0_i32_8] : memref<8x32xf32, #tpu.memory_space<vmem>> -> memref<1x32xf32, #tpu.memory_space<vmem>>
    %15 = tpu.memref_squeeze %14 : memref<1x32xf32, #tpu.memory_space<vmem>> -> memref<32xf32, #tpu.memory_space<vmem>>
    %16 = tpu.memref_slice %arg8[%c1_i32_6] : memref<8x!tpu.dma_semaphore, #tpu.memory_space<semaphore_mem>> -> memref<1x!tpu.dma_semaphore, #tpu.memory_space<semaphore_mem>>
    %17 = tpu.memref_squeeze %16 : memref<1x!tpu.dma_semaphore, #tpu.memory_space<semaphore_mem>> -> memref<!tpu.dma_semaphore, #tpu.memory_space<semaphore_mem>>
    tpu.enqueue_dma source(%13 : memref<32xf32, #tpu.memory_space<any>>) target(%15 : memref<32xf32, #tpu.memory_space<vmem>>) target_semaphore(%17 : memref<!tpu.dma_semaphore, #tpu.memory_space<semaphore_mem>>)
    %c2 = arith.constant 2 : index
    %18 = memref.load %arg0[%c2] : memref<8xi32, #tpu.memory_space<smem>>
    %c0_i32_9 = arith.constant 0 : i32
    %c15_i32_10 = arith.constant 15 : i32
    %19 = arith.maxsi %c0_i32_9, %18 : i32
    %20 = arith.minsi %c15_i32_10, %19 : i32
    %c2_i32 = arith.constant 2 : i32
    %c2_i32_11 = arith.constant 2 : i32
    %c0_i32_12 = arith.constant 0 : i32
    %21 = tpu.memref_slice %arg1[%20, %c0_i32_12] : memref<16x32xf32, #tpu.memory_space<any>> -> memref<1x32xf32, #tpu.memory_space<any>>
    %22 = tpu.memref_squeeze %21 : memref<1x32xf32, #tpu.memory_space<any>> -> memref<32xf32, #tpu.memory_space<any>>
    %c0_i32_13 = arith.constant 0 : i32
    %23 = tpu.memref_slice %arg7[%c2_i32, %c0_i32_13] : memref<8x32xf32, #tpu.memory_space<vmem>> -> memref<1x32xf32, #tpu.memory_space<vmem>>
    %24 = tpu.memref_squeeze %23 : memref<1x32xf32, #tpu.memory_space<vmem>> -> memref<32xf32, #tpu.memory_space<vmem>>
    %25 = tpu.memref_slice %arg8[%c2_i32_11] : memref<8x!tpu.dma_semaphore, #tpu.memory_space<semaphore_mem>> -> memref<1x!tpu.dma_semaphore, #tpu.memory_space<semaphore_mem>>
    %26 = tpu.memref_squeeze %25 : memref<1x!tpu.dma_semaphore, #tpu.memory_space<semaphore_mem>> -> memref<!tpu.dma_semaphore, #tpu.memory_space<semaphore_mem>>
    tpu.enqueue_dma source(%22 : memref<32xf32, #tpu.memory_space<any>>) target(%24 : memref<32xf32, #tpu.memory_space<vmem>>) target_semaphore(%26 : memref<!tpu.dma_semaphore, #tpu.memory_space<semaphore_mem>>)
    %c3 = arith.constant 3 : index
    %27 = memref.load %arg0[%c3] : memref<8xi32, #tpu.memory_space<smem>>
    %c0_i32_14 = arith.constant 0 : i32
    %c15_i32_15 = arith.constant 15 : i32
    %28 = arith.maxsi %c0_i32_14, %27 : i32
    %29 = arith.minsi %c15_i32_15, %28 : i32
    %c3_i32 = arith.constant 3 : i32
    %c3_i32_16 = arith.constant 3 : i32
    %c0_i32_17 = arith.constant 0 : i32
    %30 = tpu.memref_slice %arg1[%29, %c0_i32_17] : memref<16x32xf32, #tpu.memory_space<any>> -> memref<1x32xf32, #tpu.memory_space<any>>
    %31 = tpu.memref_squeeze %30 : memref<1x32xf32, #tpu.memory_space<any>> -> memref<32xf32, #tpu.memory_space<any>>
    %c0_i32_18 = arith.constant 0 : i32
    %32 = tpu.memref_slice %arg7[%c3_i32, %c0_i32_18] : memref<8x32xf32, #tpu.memory_space<vmem>> -> memref<1x32xf32, #tpu.memory_space<vmem>>
    %33 = tpu.memref_squeeze %32 : memref<1x32xf32, #tpu.memory_space<vmem>> -> memref<32xf32, #tpu.memory_space<vmem>>
    %34 = tpu.memref_slice %arg8[%c3_i32_16] : memref<8x!tpu.dma_semaphore, #tpu.memory_space<semaphore_mem>> -> memref<1x!tpu.dma_semaphore, #tpu.memory_space<semaphore_mem>>
    %35 = tpu.memref_squeeze %34 : memref<1x!tpu.dma_semaphore, #tpu.memory_space<semaphore_mem>> -> memref<!tpu.dma_semaphore, #tpu.memory_space<semaphore_mem>>
    tpu.enqueue_dma source(%31 : memref<32xf32, #tpu.memory_space<any>>) target(%33 : memref<32xf32, #tpu.memory_space<vmem>>) target_semaphore(%35 : memref<!tpu.dma_semaphore, #tpu.memory_space<semaphore_mem>>)
    %c4 = arith.constant 4 : index
    %36 = memref.load %arg0[%c4] : memref<8xi32, #tpu.memory_space<smem>>
    %c0_i32_19 = arith.constant 0 : i32
    %c15_i32_20 = arith.constant 15 : i32
    %37 = arith.maxsi %c0_i32_19, %36 : i32
    %38 = arith.minsi %c15_i32_20, %37 : i32
    %c4_i32 = arith.constant 4 : i32
    %c4_i32_21 = arith.constant 4 : i32
    %c0_i32_22 = arith.constant 0 : i32
    %39 = tpu.memref_slice %arg1[%38, %c0_i32_22] : memref<16x32xf32, #tpu.memory_space<any>> -> memref<1x32xf32, #tpu.memory_space<any>>
    %40 = tpu.memref_squeeze %39 : memref<1x32xf32, #tpu.memory_space<any>> -> memref<32xf32, #tpu.memory_space<any>>
    %c0_i32_23 = arith.constant 0 : i32
    %41 = tpu.memref_slice %arg7[%c4_i32, %c0_i32_23] : memref<8x32xf32, #tpu.memory_space<vmem>> -> memref<1x32xf32, #tpu.memory_space<vmem>>
    %42 = tpu.memref_squeeze %41 : memref<1x32xf32, #tpu.memory_space<vmem>> -> memref<32xf32, #tpu.memory_space<vmem>>
    %43 = tpu.memref_slice %arg8[%c4_i32_21] : memref<8x!tpu.dma_semaphore, #tpu.memory_space<semaphore_mem>> -> memref<1x!tpu.dma_semaphore, #tpu.memory_space<semaphore_mem>>
    %44 = tpu.memref_squeeze %43 : memref<1x!tpu.dma_semaphore, #tpu.memory_space<semaphore_mem>> -> memref<!tpu.dma_semaphore, #tpu.memory_space<semaphore_mem>>
    tpu.enqueue_dma source(%40 : memref<32xf32, #tpu.memory_space<any>>) target(%42 : memref<32xf32, #tpu.memory_space<vmem>>) target_semaphore(%44 : memref<!tpu.dma_semaphore, #tpu.memory_space<semaphore_mem>>)
    %c5 = arith.constant 5 : index
    %45 = memref.load %arg0[%c5] : memref<8xi32, #tpu.memory_space<smem>>
    %c0_i32_24 = arith.constant 0 : i32
    %c15_i32_25 = arith.constant 15 : i32
    %46 = arith.maxsi %c0_i32_24, %45 : i32
    %47 = arith.minsi %c15_i32_25, %46 : i32
    %c5_i32 = arith.constant 5 : i32
    %c5_i32_26 = arith.constant 5 : i32
    %c0_i32_27 = arith.constant 0 : i32
    %48 = tpu.memref_slice %arg1[%47, %c0_i32_27] : memref<16x32xf32, #tpu.memory_space<any>> -> memref<1x32xf32, #tpu.memory_space<any>>
    %49 = tpu.memref_squeeze %48 : memref<1x32xf32, #tpu.memory_space<any>> -> memref<32xf32, #tpu.memory_space<any>>
    %c0_i32_28 = arith.constant 0 : i32
    %50 = tpu.memref_slice %arg7[%c5_i32, %c0_i32_28] : memref<8x32xf32, #tpu.memory_space<vmem>> -> memref<1x32xf32, #tpu.memory_space<vmem>>
    %51 = tpu.memref_squeeze %50 : memref<1x32xf32, #tpu.memory_space<vmem>> -> memref<32xf32, #tpu.memory_space<vmem>>
    %52 = tpu.memref_slice %arg8[%c5_i32_26] : memref<8x!tpu.dma_semaphore, #tpu.memory_space<semaphore_mem>> -> memref<1x!tpu.dma_semaphore, #tpu.memory_space<semaphore_mem>>
    %53 = tpu.memref_squeeze %52 : memref<1x!tpu.dma_semaphore, #tpu.memory_space<semaphore_mem>> -> memref<!tpu.dma_semaphore, #tpu.memory_space<semaphore_mem>>
    tpu.enqueue_dma source(%49 : memref<32xf32, #tpu.memory_space<any>>) target(%51 : memref<32xf32, #tpu.memory_space<vmem>>) target_semaphore(%53 : memref<!tpu.dma_semaphore, #tpu.memory_space<semaphore_mem>>)
    %c6 = arith.constant 6 : index
    %54 = memref.load %arg0[%c6] : memref<8xi32, #tpu.memory_space<smem>>
    %c0_i32_29 = arith.constant 0 : i32
    %c15_i32_30 = arith.constant 15 : i32
    %55 = arith.maxsi %c0_i32_29, %54 : i32
    %56 = arith.minsi %c15_i32_30, %55 : i32
    %c6_i32 = arith.constant 6 : i32
    %c6_i32_31 = arith.constant 6 : i32
    %c0_i32_32 = arith.constant 0 : i32
    %57 = tpu.memref_slice %arg1[%56, %c0_i32_32] : memref<16x32xf32, #tpu.memory_space<any>> -> memref<1x32xf32, #tpu.memory_space<any>>
    %58 = tpu.memref_squeeze %57 : memref<1x32xf32, #tpu.memory_space<any>> -> memref<32xf32, #tpu.memory_space<any>>
    %c0_i32_33 = arith.constant 0 : i32
    %59 = tpu.memref_slice %arg7[%c6_i32, %c0_i32_33] : memref<8x32xf32, #tpu.memory_space<vmem>> -> memref<1x32xf32, #tpu.memory_space<vmem>>
    %60 = tpu.memref_squeeze %59 : memref<1x32xf32, #tpu.memory_space<vmem>> -> memref<32xf32, #tpu.memory_space<vmem>>
    %61 = tpu.memref_slice %arg8[%c6_i32_31] : memref<8x!tpu.dma_semaphore, #tpu.memory_space<semaphore_mem>> -> memref<1x!tpu.dma_semaphore, #tpu.memory_space<semaphore_mem>>
    %62 = tpu.memref_squeeze %61 : memref<1x!tpu.dma_semaphore, #tpu.memory_space<semaphore_mem>> -> memref<!tpu.dma_semaphore, #tpu.memory_space<semaphore_mem>>
    tpu.enqueue_dma source(%58 : memref<32xf32, #tpu.memory_space<any>>) target(%60 : memref<32xf32, #tpu.memory_space<vmem>>) target_semaphore(%62 : memref<!tpu.dma_semaphore, #tpu.memory_space<semaphore_mem>>)
    %c7 = arith.constant 7 : index
    %63 = memref.load %arg0[%c7] : memref<8xi32, #tpu.memory_space<smem>>
    %c0_i32_34 = arith.constant 0 : i32
    %c15_i32_35 = arith.constant 15 : i32
    %64 = arith.maxsi %c0_i32_34, %63 : i32
    %65 = arith.minsi %c15_i32_35, %64 : i32
    %c7_i32 = arith.constant 7 : i32
    %c7_i32_36 = arith.constant 7 : i32
    %c0_i32_37 = arith.constant 0 : i32
    %66 = tpu.memref_slice %arg1[%65, %c0_i32_37] : memref<16x32xf32, #tpu.memory_space<any>> -> memref<1x32xf32, #tpu.memory_space<any>>
    %67 = tpu.memref_squeeze %66 : memref<1x32xf32, #tpu.memory_space<any>> -> memref<32xf32, #tpu.memory_space<any>>
    %c0_i32_38 = arith.constant 0 : i32
    %68 = tpu.memref_slice %arg7[%c7_i32, %c0_i32_38] : memref<8x32xf32, #tpu.memory_space<vmem>> -> memref<1x32xf32, #tpu.memory_space<vmem>>
    %69 = tpu.memref_squeeze %68 : memref<1x32xf32, #tpu.memory_space<vmem>> -> memref<32xf32, #tpu.memory_space<vmem>>
    %70 = tpu.memref_slice %arg8[%c7_i32_36] : memref<8x!tpu.dma_semaphore, #tpu.memory_space<semaphore_mem>> -> memref<1x!tpu.dma_semaphore, #tpu.memory_space<semaphore_mem>>
    %71 = tpu.memref_squeeze %70 : memref<1x!tpu.dma_semaphore, #tpu.memory_space<semaphore_mem>> -> memref<!tpu.dma_semaphore, #tpu.memory_space<semaphore_mem>>
    tpu.enqueue_dma source(%67 : memref<32xf32, #tpu.memory_space<any>>) target(%69 : memref<32xf32, #tpu.memory_space<vmem>>) target_semaphore(%71 : memref<!tpu.dma_semaphore, #tpu.memory_space<semaphore_mem>>)
    %c0_i32_39 = arith.constant 0 : i32
    %c0_i32_40 = arith.constant 0 : i32
    %c0_i32_41 = arith.constant 0 : i32
    %72 = tpu.memref_slice %arg1[%2, %c0_i32_41] : memref<16x32xf32, #tpu.memory_space<any>> -> memref<1x32xf32, #tpu.memory_space<any>>
    %73 = tpu.memref_squeeze %72 : memref<1x32xf32, #tpu.memory_space<any>> -> memref<32xf32, #tpu.memory_space<any>>
    %c0_i32_42 = arith.constant 0 : i32
    %74 = tpu.memref_slice %arg7[%c0_i32_39, %c0_i32_42] : memref<8x32xf32, #tpu.memory_space<vmem>> -> memref<1x32xf32, #tpu.memory_space<vmem>>
    %75 = tpu.memref_squeeze %74 : memref<1x32xf32, #tpu.memory_space<vmem>> -> memref<32xf32, #tpu.memory_space<vmem>>
    %76 = tpu.memref_slice %arg8[%c0_i32_40] : memref<8x!tpu.dma_semaphore, #tpu.memory_space<semaphore_mem>> -> memref<1x!tpu.dma_semaphore, #tpu.memory_space<semaphore_mem>>
    %77 = tpu.memref_squeeze %76 : memref<1x!tpu.dma_semaphore, #tpu.memory_space<semaphore_mem>> -> memref<!tpu.dma_semaphore, #tpu.memory_space<semaphore_mem>>
    tpu.wait_dma2 semaphore(%77 : memref<!tpu.dma_semaphore, #tpu.memory_space<semaphore_mem>>) src(%73 : memref<32xf32, #tpu.memory_space<any>>) dst(%75 : memref<32xf32, #tpu.memory_space<vmem>>)
    %c1_i32_43 = arith.constant 1 : i32
    %c1_i32_44 = arith.constant 1 : i32
    %c0_i32_45 = arith.constant 0 : i32
    %78 = tpu.memref_slice %arg1[%11, %c0_i32_45] : memref<16x32xf32, #tpu.memory_space<any>> -> memref<1x32xf32, #tpu.memory_space<any>>
    %79 = tpu.memref_squeeze %78 : memref<1x32xf32, #tpu.memory_space<any>> -> memref<32xf32, #tpu.memory_space<any>>
    %c0_i32_46 = arith.constant 0 : i32
    %80 = tpu.memref_slice %arg7[%c1_i32_43, %c0_i32_46] : memref<8x32xf32, #tpu.memory_space<vmem>> -> memref<1x32xf32, #tpu.memory_space<vmem>>
    %81 = tpu.memref_squeeze %80 : memref<1x32xf32, #tpu.memory_space<vmem>> -> memref<32xf32, #tpu.memory_space<vmem>>
    %82 = tpu.memref_slice %arg8[%c1_i32_44] : memref<8x!tpu.dma_semaphore, #tpu.memory_space<semaphore_mem>> -> memref<1x!tpu.dma_semaphore, #tpu.memory_space<semaphore_mem>>
    %83 = tpu.memref_squeeze %82 : memref<1x!tpu.dma_semaphore, #tpu.memory_space<semaphore_mem>> -> memref<!tpu.dma_semaphore, #tpu.memory_space<semaphore_mem>>
    tpu.wait_dma2 semaphore(%83 : memref<!tpu.dma_semaphore, #tpu.memory_space<semaphore_mem>>) src(%79 : memref<32xf32, #tpu.memory_space<any>>) dst(%81 : memref<32xf32, #tpu.memory_space<vmem>>)
    %c2_i32_47 = arith.constant 2 : i32
    %c2_i32_48 = arith.constant 2 : i32
    %c0_i32_49 = arith.constant 0 : i32
    %84 = tpu.memref_slice %arg1[%20, %c0_i32_49] : memref<16x32xf32, #tpu.memory_space<any>> -> memref<1x32xf32, #tpu.memory_space<any>>
    %85 = tpu.memref_squeeze %84 : memref<1x32xf32, #tpu.memory_space<any>> -> memref<32xf32, #tpu.memory_space<any>>
    %c0_i32_50 = arith.constant 0 : i32
    %86 = tpu.memref_slice %arg7[%c2_i32_47, %c0_i32_50] : memref<8x32xf32, #tpu.memory_space<vmem>> -> memref<1x32xf32, #tpu.memory_space<vmem>>
    %87 = tpu.memref_squeeze %86 : memref<1x32xf32, #tpu.memory_space<vmem>> -> memref<32xf32, #tpu.memory_space<vmem>>
    %88 = tpu.memref_slice %arg8[%c2_i32_48] : memref<8x!tpu.dma_semaphore, #tpu.memory_space<semaphore_mem>> -> memref<1x!tpu.dma_semaphore, #tpu.memory_space<semaphore_mem>>
    %89 = tpu.memref_squeeze %88 : memref<1x!tpu.dma_semaphore, #tpu.memory_space<semaphore_mem>> -> memref<!tpu.dma_semaphore, #tpu.memory_space<semaphore_mem>>
    tpu.wait_dma2 semaphore(%89 : memref<!tpu.dma_semaphore, #tpu.memory_space<semaphore_mem>>) src(%85 : memref<32xf32, #tpu.memory_space<any>>) dst(%87 : memref<32xf32, #tpu.memory_space<vmem>>)
    %c3_i32_51 = arith.constant 3 : i32
    %c3_i32_52 = arith.constant 3 : i32
    %c0_i32_53 = arith.constant 0 : i32
    %90 = tpu.memref_slice %arg1[%29, %c0_i32_53] : memref<16x32xf32, #tpu.memory_space<any>> -> memref<1x32xf32, #tpu.memory_space<any>>
    %91 = tpu.memref_squeeze %90 : memref<1x32xf32, #tpu.memory_space<any>> -> memref<32xf32, #tpu.memory_space<any>>
    %c0_i32_54 = arith.constant 0 : i32
    %92 = tpu.memref_slice %arg7[%c3_i32_51, %c0_i32_54] : memref<8x32xf32, #tpu.memory_space<vmem>> -> memref<1x32xf32, #tpu.memory_space<vmem>>
    %93 = tpu.memref_squeeze %92 : memref<1x32xf32, #tpu.memory_space<vmem>> -> memref<32xf32, #tpu.memory_space<vmem>>
    %94 = tpu.memref_slice %arg8[%c3_i32_52] : memref<8x!tpu.dma_semaphore, #tpu.memory_space<semaphore_mem>> -> memref<1x!tpu.dma_semaphore, #tpu.memory_space<semaphore_mem>>
    %95 = tpu.memref_squeeze %94 : memref<1x!tpu.dma_semaphore, #tpu.memory_space<semaphore_mem>> -> memref<!tpu.dma_semaphore, #tpu.memory_space<semaphore_mem>>
    tpu.wait_dma2 semaphore(%95 : memref<!tpu.dma_semaphore, #tpu.memory_space<semaphore_mem>>) src(%91 : memref<32xf32, #tpu.memory_space<any>>) dst(%93 : memref<32xf32, #tpu.memory_space<vmem>>)
    %c4_i32_55 = arith.constant 4 : i32
    %c4_i32_56 = arith.constant 4 : i32
    %c0_i32_57 = arith.constant 0 : i32
    %96 = tpu.memref_slice %arg1[%38, %c0_i32_57] : memref<16x32xf32, #tpu.memory_space<any>> -> memref<1x32xf32, #tpu.memory_space<any>>
    %97 = tpu.memref_squeeze %96 : memref<1x32xf32, #tpu.memory_space<any>> -> memref<32xf32, #tpu.memory_space<any>>
    %c0_i32_58 = arith.constant 0 : i32
    %98 = tpu.memref_slice %arg7[%c4_i32_55, %c0_i32_58] : memref<8x32xf32, #tpu.memory_space<vmem>> -> memref<1x32xf32, #tpu.memory_space<vmem>>
    %99 = tpu.memref_squeeze %98 : memref<1x32xf32, #tpu.memory_space<vmem>> -> memref<32xf32, #tpu.memory_space<vmem>>
    %100 = tpu.memref_slice %arg8[%c4_i32_56] : memref<8x!tpu.dma_semaphore, #tpu.memory_space<semaphore_mem>> -> memref<1x!tpu.dma_semaphore, #tpu.memory_space<semaphore_mem>>
    %101 = tpu.memref_squeeze %100 : memref<1x!tpu.dma_semaphore, #tpu.memory_space<semaphore_mem>> -> memref<!tpu.dma_semaphore, #tpu.memory_space<semaphore_mem>>
    tpu.wait_dma2 semaphore(%101 : memref<!tpu.dma_semaphore, #tpu.memory_space<semaphore_mem>>) src(%97 : memref<32xf32, #tpu.memory_space<any>>) dst(%99 : memref<32xf32, #tpu.memory_space<vmem>>)
    %c5_i32_59 = arith.constant 5 : i32
    %c5_i32_60 = arith.constant 5 : i32
    %c0_i32_61 = arith.constant 0 : i32
    %102 = tpu.memref_slice %arg1[%47, %c0_i32_61] : memref<16x32xf32, #tpu.memory_space<any>> -> memref<1x32xf32, #tpu.memory_space<any>>
    %103 = tpu.memref_squeeze %102 : memref<1x32xf32, #tpu.memory_space<any>> -> memref<32xf32, #tpu.memory_space<any>>
    %c0_i32_62 = arith.constant 0 : i32
    %104 = tpu.memref_slice %arg7[%c5_i32_59, %c0_i32_62] : memref<8x32xf32, #tpu.memory_space<vmem>> -> memref<1x32xf32, #tpu.memory_space<vmem>>
    %105 = tpu.memref_squeeze %104 : memref<1x32xf32, #tpu.memory_space<vmem>> -> memref<32xf32, #tpu.memory_space<vmem>>
    %106 = tpu.memref_slice %arg8[%c5_i32_60] : memref<8x!tpu.dma_semaphore, #tpu.memory_space<semaphore_mem>> -> memref<1x!tpu.dma_semaphore, #tpu.memory_space<semaphore_mem>>
    %107 = tpu.memref_squeeze %106 : memref<1x!tpu.dma_semaphore, #tpu.memory_space<semaphore_mem>> -> memref<!tpu.dma_semaphore, #tpu.memory_space<semaphore_mem>>
    tpu.wait_dma2 semaphore(%107 : memref<!tpu.dma_semaphore, #tpu.memory_space<semaphore_mem>>) src(%103 : memref<32xf32, #tpu.memory_space<any>>) dst(%105 : memref<32xf32, #tpu.memory_space<vmem>>)
    %c6_i32_63 = arith.constant 6 : i32
    %c6_i32_64 = arith.constant 6 : i32
    %c0_i32_65 = arith.constant 0 : i32
    %108 = tpu.memref_slice %arg1[%56, %c0_i32_65] : memref<16x32xf32, #tpu.memory_space<any>> -> memref<1x32xf32, #tpu.memory_space<any>>
    %109 = tpu.memref_squeeze %108 : memref<1x32xf32, #tpu.memory_space<any>> -> memref<32xf32, #tpu.memory_space<any>>
    %c0_i32_66 = arith.constant 0 : i32
    %110 = tpu.memref_slice %arg7[%c6_i32_63, %c0_i32_66] : memref<8x32xf32, #tpu.memory_space<vmem>> -> memref<1x32xf32, #tpu.memory_space<vmem>>
    %111 = tpu.memref_squeeze %110 : memref<1x32xf32, #tpu.memory_space<vmem>> -> memref<32xf32, #tpu.memory_space<vmem>>
    %112 = tpu.memref_slice %arg8[%c6_i32_64] : memref<8x!tpu.dma_semaphore, #tpu.memory_space<semaphore_mem>> -> memref<1x!tpu.dma_semaphore, #tpu.memory_space<semaphore_mem>>
    %113 = tpu.memref_squeeze %112 : memref<1x!tpu.dma_semaphore, #tpu.memory_space<semaphore_mem>> -> memref<!tpu.dma_semaphore, #tpu.memory_space<semaphore_mem>>
    tpu.wait_dma2 semaphore(%113 : memref<!tpu.dma_semaphore, #tpu.memory_space<semaphore_mem>>) src(%109 : memref<32xf32, #tpu.memory_space<any>>) dst(%111 : memref<32xf32, #tpu.memory_space<vmem>>)
    %c7_i32_67 = arith.constant 7 : i32
    %c7_i32_68 = arith.constant 7 : i32
    %c0_i32_69 = arith.constant 0 : i32
    %114 = tpu.memref_slice %arg1[%65, %c0_i32_69] : memref<16x32xf32, #tpu.memory_space<any>> -> memref<1x32xf32, #tpu.memory_space<any>>
    %115 = tpu.memref_squeeze %114 : memref<1x32xf32, #tpu.memory_space<any>> -> memref<32xf32, #tpu.memory_space<any>>
    %c0_i32_70 = arith.constant 0 : i32
    %116 = tpu.memref_slice %arg7[%c7_i32_67, %c0_i32_70] : memref<8x32xf32, #tpu.memory_space<vmem>> -> memref<1x32xf32, #tpu.memory_space<vmem>>
    %117 = tpu.memref_squeeze %116 : memref<1x32xf32, #tpu.memory_space<vmem>> -> memref<32xf32, #tpu.memory_space<vmem>>
    %118 = tpu.memref_slice %arg8[%c7_i32_68] : memref<8x!tpu.dma_semaphore, #tpu.memory_space<semaphore_mem>> -> memref<1x!tpu.dma_semaphore, #tpu.memory_space<semaphore_mem>>
    %119 = tpu.memref_squeeze %118 : memref<1x!tpu.dma_semaphore, #tpu.memory_space<semaphore_mem>> -> memref<!tpu.dma_semaphore, #tpu.memory_space<semaphore_mem>>
    tpu.wait_dma2 semaphore(%119 : memref<!tpu.dma_semaphore, #tpu.memory_space<semaphore_mem>>) src(%115 : memref<32xf32, #tpu.memory_space<any>>) dst(%117 : memref<32xf32, #tpu.memory_space<vmem>>)
    %c0_71 = arith.constant 0 : index
    %c0_72 = arith.constant 0 : index
    %120 = vector.load %arg7[%c0_71, %c0_72] : memref<8x32xf32, #tpu.memory_space<vmem>>, vector<8x32xf32>
    %c0_73 = arith.constant 0 : index
    %c0_74 = arith.constant 0 : index
    %121 = vector.load %arg2[%c0_73, %c0_74] : memref<32x128xf32, #tpu.memory_space<vmem>>, vector<32x128xf32>
    %cst = arith.constant dense<0.000000e+00> : vector<8x128xf32>
    %122 = tpu.matmul %120, %121, %cst {dimension_numbers = #tpu.dot_dimension_numbers<[1], [0], [0], [1], [0, 0, 1, 1], [], []>} : vector<8x32xf32>, vector<32x128xf32>, vector<8x128xf32> -> vector<8x128xf32>
    %c0_75 = arith.constant 0 : index
    %c0_76 = arith.constant 0 : index
    %123 = vector.load %arg3[%c0_75, %c0_76] : memref<1x128xf32, #tpu.memory_space<vmem>>, vector<1x128xf32>
    %124 = vector.broadcast %123 : vector<1x128xf32> to vector<8x128xf32>
    %125 = arith.addf %122, %124 : vector<8x128xf32>
    %cst_77 = arith.constant 0.000000e+00 : f32
    %126 = vector.broadcast %cst_77 : f32 to vector<8x128xf32>
    %127 = arith.subf %126, %125 : vector<8x128xf32>
    %128 = math.exp %127 : vector<8x128xf32>
    %cst_78 = arith.constant 1.000000e+00 : f32
    %129 = vector.broadcast %cst_78 : f32 to vector<8x128xf32>
    %130 = arith.addf %129, %128 : vector<8x128xf32>
    %131 = tpu.reciprocal %130 : vector<8x128xf32> -> vector<8x128xf32>
    %132 = arith.mulf %125, %131 : vector<8x128xf32>
    %c0_79 = arith.constant 0 : index
    %c0_80 = arith.constant 0 : index
    %133 = vector.load %arg4[%c0_79, %c0_80] : memref<128x128xf32, #tpu.memory_space<vmem>>, vector<128x128xf32>
    %cst_81 = arith.constant dense<0.000000e+00> : vector<8x128xf32>
    %134 = tpu.matmul %132, %133, %cst_81 {dimension_numbers = #tpu.dot_dimension_numbers<[1], [0], [0], [1], [0, 0, 1, 1], [], []>} : vector<8x128xf32>, vector<128x128xf32>, vector<8x128xf32> -> vector<8x128xf32>
    %c0_82 = arith.constant 0 : index
    %c0_83 = arith.constant 0 : index
    %135 = vector.load %arg5[%c0_82, %c0_83] : memref<1x128xf32, #tpu.memory_space<vmem>>, vector<1x128xf32>
    %136 = vector.broadcast %135 : vector<1x128xf32> to vector<8x128xf32>
    %137 = arith.addf %134, %136 : vector<8x128xf32>
    %c0_84 = arith.constant 0 : index
    %c0_85 = arith.constant 0 : index
    %138 = vector.load %arg6[%c0_84, %c0_85] : memref<8x128xf32, #tpu.memory_space<vmem>>, vector<8x128xf32>
    tpu.vector_store %arg6[%c0_84, %c0_85], %137 {strides = array<i32>} : memref<8x128xf32, #tpu.memory_space<vmem>>, vector<8x128xf32>,
    return
  }
}

</mosaic_0001>

<bundles_post_ra>
// kernel: tpu_custom_call.1
= control target key start
LH: loop header
LB: loop body
LE: loop exit
PB: predicated region body
PF: predicated region fallthrough
CT: control target
= control target key end

     0   :  { %11 = vsyncpa [#allocation7], 0  ;;  %s1249_s0 = inlined_call_operand.hbm [shape: s32[8], index: 0, kind: input, shape index: {}]   ;;  %s1250_s1 = inlined_call_operand.hbm [shape: f32[16,32], index: 1, kind: input, shape index: {}]   ;;  %s1251_s2 = inlined_call_operand.hbm [shape: f32[32,128], index: 2, kind: input, shape index: {}]   ;;  %s1252_s3 = inlined_call_operand.vmem [shape: f32[1,128], index: 3, kind: input, shape index: {}]   ;;  %s1253_s4 = inlined_call_operand.hbm [shape: f32[128,128], index: 4, kind: input, shape index: {}]   ;;  %s1254_s5 = inlined_call_operand.vmem [shape: f32[1,128], index: 5, kind: input, shape index: {}]   ;;  %s1255_s6 = inlined_call_operand.hbm [shape: f32[8,128], index: 6, kind: output, shape index: {}]  }
   0x1   :  { %12 = vsyncpa [#allocation5], 0 }
   0x2   :  { %13 = vsyncpa [#allocation10], 0 }
   0x3   :  { %14 = vsyncpa [#allocation6], 0  ;;  %s710_s23 = scalar_lea.hbm %s1249_s0, 16 }
   0x4   :  { %p711_p0 = scmp.ne.s32.totalorder %s1249_s0, %s710_s23  ;;  %p714_p1 = scmp.lt.u32.totalorder %s710_s23, %s1249_s0 }
   0x6   :  { %p716_p2 = pnand %p714_p1, %p711_p0 }
   0x8   :  { %719 = shalt.err (!%p716_p2)
}
   0x9   :  { %s1002_s28 = smov [#allocation4]   ;;  %s1003_s7 = smov [#allocation8]  }
   0xa   :  { %22 = dma.hbm_to_smem %s1249_s0, 16, %s1002_s28, [#allocation7]  }
   0xb   :  { %s28_s8 = sshll.u32 %s1003_s7, 4  ;;  %s720_s11 = scalar_lea.hbm %s1251_s2, 512  ;;  %s29_s8 = int_to_ptr.vmem [resolvable:$true] %s28_s8 }
   0xc   :  { %p721_p3 = scmp.ne.s32.totalorder %s1251_s2, %s720_s11  ;;  %p724_p4 = scmp.lt.u32.totalorder %s720_s11, %s1251_s2 }
   0xe   :  { %p726_p5 = pnand %p724_p4, %p721_p3 }
  0x10   :  { %729 = shalt.err (!%p726_p5)
}
  0x11   :  { %s730_s16 = scalar_lea.vmem %s29_s8, 512  ;;  %p735_p7 = scmp.lt.s32.totalorder %s29_s8, %s29_s8 }
  0x12   :  { %p731_p6 = scmp.ne.s32.totalorder %s29_s8, %s730_s16  ;;  %p736_p8 = scmp.lt.s32.totalorder %s730_s16, %s730_s16 }
  0x14   :  { %p737_p9 = por %p736_p8, %p735_p7 }
  0x16   :  { %p738_p10 = pnand %p737_p9, %p731_p6 }
  0x18   :  { %741 = shalt.err (!%p738_p10)
}
  0x19   :  { %s1004_s0 = smov 128   ;;  %s1005_s17 = smov 8  }
  0x1a   :  { %34 = dma.hbm_to_vmem [thread:$0]  %s1251_s2, 512, %s29_s8, [#allocation5], %s1004_s0, %s1004_s0, %s1005_s17  }
  0x1b   :  { %s1006_s20 = smov [#allocation9]   ;;  %s742_s24 = scalar_lea.hbm %s1253_s4, 2048 }
  0x1c   :  { %s42_s21 = sshll.u32 %s1006_s20, 4  ;;  %p743_p11 = scmp.ne.s32.totalorder %s1253_s4, %s742_s24  ;;  %s43_s21 = int_to_ptr.vmem [resolvable:$true] %s42_s21 }
  0x1d   :  { %p746_p12 = scmp.lt.u32.totalorder %s742_s24, %s1253_s4 }
  0x1f   :  { %p748_p13 = pnand %p746_p12, %p743_p11 }
  0x21   :  { %751 = shalt.err (!%p748_p13)
}
  0x22   :  { %s752_s29 = scalar_lea.vmem %s43_s21, 2048  ;;  %p757_p1 = scmp.lt.s32.totalorder %s43_s21, %s43_s21 }
  0x23   :  { %p753_p0 = scmp.ne.s32.totalorder %s43_s21, %s752_s29  ;;  %p758_p2 = scmp.lt.s32.totalorder %s752_s29, %s752_s29 }
  0x25   :  { %p759_p3 = por %p758_p2, %p757_p1 }
  0x27   :  { %p760_p4 = pnand %p759_p3, %p753_p0 }
  0x29   :  { %763 = shalt.err (!%p760_p4)
}
  0x2a   :  { %48 = dma.hbm_to_vmem [thread:$0]  %s1253_s4, 2048, %s43_s21, [#allocation10], %s1004_s0, %s1004_s0, %s1005_s17  }
  0x2b   :  { %978 = dma.done.wait [#allocation7], 16  }
  0x2c   :  { %979 = vsyncadd [#allocation7], 4294967280 }
  0x2d   :  { %980 = dma.done.wait [#allocation5], 512  }
  0x2e   :  { %981 = vsyncadd [#allocation5], 4294966784 }
  0x2f   :  { %982 = dma.done.wait [#allocation10], 2048  }
  0x30   :  { %983 = vsyncadd [#allocation10], 4294965248 }
  0x31   :  { %60 = sfence }
  0x32   :  { %s61_s7 = sld [smem:[#allocation4]]  ;;  %s1007_s8 = smov [#allocation2]  }
  0x33   :  { %s75_s9 = sshll.u32 %s1007_s8, 4  ;;  %s515_s10 = sld [smem:[#allocation4 + $0x1]]  ;;  %s1090_s9 = int_to_ptr.vmem [resolvable:$true] %s75_s9 }
  0x34   :  { %s1008_s11 = smov [#allocation2 + $0x1]   ;;  %s1092_s13 = sld [smem:[#allocation4 + $0x2]] }
  0x35   :  { %s95_s12 = sshll.u32 %s1008_s11, 4  ;;  %s1009_s4 = smov [#allocation2 + $0x2]   ;;  %s1094_s12 = int_to_ptr.vmem [resolvable:$true] %s95_s12 }
  0x36   :  { %s1096_s14 = sshll.u32 %s1009_s4, 4  ;;  %s1098_s15 = sld [smem:[#allocation4 + $0x3]]  ;;  %s116_s14 = int_to_ptr.vmem [resolvable:$true] %s1096_s14 }
  0x37   :  { %s1107_s23 = scalar_lea.hbm %s1250_s1, 256 }
  0x38   :  { %p62_p5 = scmp.gt.s32.totalorder %s61_s7, 0  ;;  %p509_p6 = scmp.lt.s32.totalorder %s61_s7, 15 }
  0x39   :  { %p80_p7 = scmp.gt.s32.totalorder %s515_s10, 0  ;;  %p516_p8 = scmp.lt.s32.totalorder %s515_s10, 15 }
  0x3a   :  { %s1258_s7 = smov (!%p62_p5, %s61_s7), 0  ;;  %p100_p9 = scmp.gt.s32.totalorder %s1092_s13, 0 }
  0x3b   :  { %s1260_s10 = smov (!%p80_p7, %s515_s10), 0  ;;  %s1262_s7 = smov (!%p509_p6, %s1258_s7), 15 }
  0x3c   :  { %s1264_s10 = smov (!%p516_p8, %s1260_s10), 15  ;;  %s514_s16 = sshll.u32 %s1262_s7, 4 }
  0x3d   :  { %s67_s18 = scalar_lea.hbm %s1250_s1, %s514_s16  ;;  %s521_s19 = sshll.u32 %s1264_s10, 4 }
  0x3e   :  { %s764_s20 = scalar_lea.hbm %s67_s18, 16  ;;  %p767_p11 = scmp.lt.u32.totalorder %s67_s18, %s1250_s1 }
  0x3f   :  { %p765_p10 = scmp.ne.s32.totalorder %s67_s18, %s764_s20  ;;  %p768_p12 = scmp.lt.u32.totalorder %s1107_s23, %s764_s20 }
  0x40   :  { %p770_p0 = scmp.lt.u32.totalorder %s764_s20, %s67_s18 }
  0x41   :  { %p769_p13 = por %p768_p12, %p767_p11 }
  0x43   :  { %p771_p1 = por %p770_p0, %p769_p13 }
  0x45   :  { %p772_p2 = pnand %p771_p1, %p765_p10 }
  0x47   :  { %775 = shalt.err (!%p772_p2)  }
  0x48   :  { %s776_s26 = scalar_lea.vmem %s1090_s9, 16  ;;  %s1116_s27 = scalar_lea.vmem %s1090_s9, 128 }
  0x49   :  { %p777_p3 = scmp.ne.s32.totalorder %s1090_s9, %s776_s26  ;;  %p781_p4 = scmp.lt.s32.totalorder %s1090_s9, %s1090_s9 }
  0x4a   :  { %p782_p5 = scmp.lt.s32.totalorder %s1116_s27, %s776_s26 }
  0x4c   :  { %p783_p6 = por %p782_p5, %p781_p4 }
  0x4e   :  { %p784_p7 = pnand %p783_p6, %p777_p3 }
  0x50   :  { %787 = shalt.err (!%p784_p7)  }
  0x51   :  { %78 = dma.hbm_to_vmem [thread:$0]  %s67_s18, 16, %s1090_s9, [#allocation3] }
  0x52   :  { %s85_s2 = scalar_lea.hbm %s1250_s1, %s521_s19  ;;  %p523_p8 = scmp.lt.s32.totalorder %s1092_s13, 15 }
  0x53   :  { %s788_s30 = scalar_lea.hbm %s85_s2, 16  ;;  %p791_p11 = scmp.lt.u32.totalorder %s85_s2, %s1250_s1 }
  0x54   :  { %p789_p10 = scmp.ne.s32.totalorder %s85_s2, %s788_s30  ;;  %p792_p12 = scmp.lt.u32.totalorder %s1107_s23, %s788_s30 }
  0x55   :  { %p794_p0 = scmp.lt.u32.totalorder %s788_s30, %s85_s2 }
  0x56   :  { %p793_p13 = por %p792_p12, %p791_p11 }
  0x58   :  { %p795_p1 = por %p794_p0, %p793_p13 }
  0x5a   :  { %p796_p2 = pnand %p795_p1, %p789_p10 }
  0x5c   :  { %799 = shalt.err (!%p796_p2)  }
  0x5d   :  { %s800_s10 = scalar_lea.vmem %s1094_s12, 16  ;;  %p805_p4 = scmp.lt.s32.totalorder %s1094_s12, %s1090_s9 }
  0x5e   :  { %p801_p3 = scmp.ne.s32.totalorder %s1094_s12, %s800_s10  ;;  %p806_p5 = scmp.lt.s32.totalorder %s1116_s27, %s800_s10 }
  0x60   :  { %p807_p6 = por %p806_p5, %p805_p4 }
  0x62   :  { %p808_p7 = pnand %p807_p6, %p801_p3 }
  0x64   :  { %811 = shalt.err (!%p808_p7)  }
  0x65   :  { %98 = dma.hbm_to_vmem [thread:$0]  %s85_s2, 16, %s1094_s12, [#allocation3 + $0x1] }
  0x66   :  { %s101_s11 = scalar_select %p100_p9, %s1092_s13, 0 }
  0x67   :  { %p120_p10 = scmp.gt.s32.totalorder %s1098_s15, 0  ;;  %p530_p11 = scmp.lt.s32.totalorder %s1098_s15, 15 }
  0x68   :  { %s1266_s11 = smov (!%p523_p8, %s101_s11), 15 }
  0x69   :  { %s121_s4 = scalar_select %p120_p10, %s1098_s15, 0 }
  0x6a   :  { %s528_s16 = sshll.u32 %s1266_s11, 4 }
  0x6b   :  { %s105_s18 = scalar_lea.hbm %s1250_s1, %s528_s16 }
  0x6c   :  { %s812_s19 = scalar_lea.hbm %s105_s18, 16  ;;  %p815_p13 = scmp.lt.u32.totalorder %s105_s18, %s1250_s1 }
  0x6d   :  { %p813_p12 = scmp.ne.s32.totalorder %s105_s18, %s812_s19  ;;  %p816_p0 = scmp.lt.u32.totalorder %s1107_s23, %s812_s19 }
  0x6e   :  { %p818_p9 = scmp.lt.u32.totalorder %s812_s19, %s105_s18 }
  0x6f   :  { %p817_p1 = por %p816_p0, %p815_p13 }
  0x71   :  { %p819_p2 = por %p818_p9, %p817_p1 }
  0x73   :  { %p820_p3 = pnand %p819_p2, %p813_p12 }
  0x75   :  { %823 = shalt.err (!%p820_p3)  }
  0x76   :  { %s824_s12 = scalar_lea.vmem %s116_s14, 16  ;;  %p829_p4 = scmp.lt.s32.totalorder %s116_s14, %s1090_s9 }
  0x77   :  { %p825_p8 = scmp.ne.s32.totalorder %s116_s14, %s824_s12  ;;  %p830_p5 = scmp.lt.s32.totalorder %s1116_s27, %s824_s12 }
  0x79   :  { %p831_p6 = por %p830_p5, %p829_p4 }
  0x7b   :  { %p832_p7 = pnand %p831_p6, %p825_p8 }
  0x7d   :  { %835 = shalt.err (!%p832_p7)  }
  0x7e   :  { %118 = dma.hbm_to_vmem [thread:$0]  %s105_s18, 16, %s116_s14, [#allocation3 + $0x2] }
  0x7f   :  { %s1268_s4 = smov (!%p530_p11, %s121_s4), 15  ;;  %s1010_s13 = smov [#allocation2 + $0x3]  }
  0x80   :  { %s135_s22 = sshll.u32 %s1010_s13, 4  ;;  %s1156_s24 = sld [smem:[#allocation4 + $0x4]]  ;;  %s136_s22 = int_to_ptr.vmem [resolvable:$true] %s135_s22 }
  0x81   :  { %s535_s25 = sshll.u32 %s1268_s4, 4 }
  0x82   :  { %s125_s29 = scalar_lea.hbm %s1250_s1, %s535_s25 }
  0x83   :  { %s836_s2 = scalar_lea.hbm %s125_s29, 16  ;;  %p839_p12 = scmp.lt.u32.totalorder %s125_s29, %s1250_s1 }
  0x84   :  { %p837_p10 = scmp.ne.s32.totalorder %s125_s29, %s836_s2  ;;  %p840_p13 = scmp.lt.u32.totalorder %s1107_s23, %s836_s2 }
  0x85   :  { %p842_p1 = scmp.lt.u32.totalorder %s836_s2, %s125_s29 }
  0x86   :  { %p841_p0 = por %p840_p13, %p839_p12 }
  0x88   :  { %p843_p11 = por %p842_p1, %p841_p0 }
  0x8a   :  { %p844_p9 = pnand %p843_p11, %p837_p10 }
  0x8c   :  { %847 = shalt.err (!%p844_p9)  }
  0x8d   :  { %s848_s14 = scalar_lea.vmem %s136_s22, 16  ;;  %p853_p3 = scmp.lt.s32.totalorder %s136_s22, %s1090_s9 }
  0x8e   :  { %p849_p2 = scmp.ne.s32.totalorder %s136_s22, %s848_s14  ;;  %p854_p8 = scmp.lt.s32.totalorder %s1116_s27, %s848_s14 }
  0x90   :  { %p855_p4 = por %p854_p8, %p853_p3 }
  0x92   :  { %p856_p5 = pnand %p855_p4, %p849_p2 }
  0x94   :  { %859 = shalt.err (!%p856_p5)  }
  0x95   :  { %138 = dma.hbm_to_vmem [thread:$0]  %s125_s29, 16, %s136_s22, [#allocation3 + $0x3] }
  0x96   :  { %s1167_s15 = sld [smem:[#allocation4 + $0x5]]  ;;  %s1011_s8 = smov [#allocation2 + $0x4]  }
  0x97   :  { %s155_s10 = sshll.u32 %s1011_s8, 4  ;;  %p140_p6 = scmp.gt.s32.totalorder %s1156_s24, 0  ;;  %s156_s10 = int_to_ptr.vmem [resolvable:$true] %s155_s10 }
  0x98   :  { %p537_p7 = scmp.lt.s32.totalorder %s1156_s24, 15  ;;  %s1171_s11 = sld [smem:[#allocation4 + $0x6]] }
  0x99   :  { %s1270_s24 = smov (!%p140_p6, %s1156_s24), 0  ;;  %s1012_s4 = smov [#allocation2 + $0x5]  }
  0x9a   :  { %s175_s16 = sshll.u32 %s1012_s4, 4  ;;  %s1272_s24 = smov (!%p537_p7, %s1270_s24), 15  ;;  %s176_s16 = int_to_ptr.vmem [resolvable:$true] %s175_s16 }
  0x9b   :  { %s542_s0 = sshll.u32 %s1272_s24, 4 }
  0x9c   :  { %p160_p10 = scmp.gt.s32.totalorder %s1167_s15, 0  ;;  %s145_s19 = scalar_lea.hbm %s1250_s1, %s542_s0 }
  0x9d   :  { %s860_s20 = scalar_lea.hbm %s145_s19, 16  ;;  %p863_p1 = scmp.lt.u32.totalorder %s145_s19, %s1250_s1 }
  0x9e   :  { %p180_p13 = scmp.gt.s32.totalorder %s1171_s11, 0  ;;  %p861_p0 = scmp.ne.s32.totalorder %s145_s19, %s860_s20 }
  0x9f   :  { %p864_p11 = scmp.lt.u32.totalorder %s1107_s23, %s860_s20  ;;  %p866_p2 = scmp.lt.u32.totalorder %s860_s20, %s145_s19 }
  0xa1   :  { %p865_p9 = por %p864_p11, %p863_p1 }
  0xa3   :  { %p867_p3 = por %p866_p2, %p865_p9 }
  0xa5   :  { %p868_p8 = pnand %p867_p3, %p861_p0 }
  0xa7   :  { %871 = shalt.err (!%p868_p8)  }
  0xa8   :  { %s872_s13 = scalar_lea.vmem %s156_s10, 16  ;;  %p877_p5 = scmp.lt.s32.totalorder %s156_s10, %s1090_s9 }
  0xa9   :  { %p873_p4 = scmp.ne.s32.totalorder %s156_s10, %s872_s13  ;;  %p878_p6 = scmp.lt.s32.totalorder %s1116_s27, %s872_s13 }
  0xab   :  { %p879_p7 = por %p878_p6, %p877_p5 }
  0xad   :  { %p880_p12 = pnand %p879_p7, %p873_p4 }
  0xaf   :  { %883 = shalt.err (!%p880_p12)  }
  0xb0   :  { %158 = dma.hbm_to_vmem [thread:$0]  %s145_s19, 16, %s156_s10, [#allocation3 + $0x4] }
  0xb1   :  { %s161_s22 = scalar_select %p160_p10, %s1167_s15, 0 }
  0xb2   :  { %s181_s24 = scalar_select %p180_p13, %s1171_s11, 0 }
  0xb3   :  { %p1256_p0 = scmp.lt.s32.totalorder %s1167_s15, 15  ;;  %p551_p1 = scmp.lt.s32.totalorder %s1171_s11, 15 }
  0xb4   :  { %s1195_s26 = sld [smem:[#allocation4 + $0x7]]  ;;  %s1013_s30 = smov [#allocation2 + $0x6]  }
  0xb5   :  { %s1274_s22 = smov (!%p1256_p0, %s161_s22), 15  ;;  %s195_s7 = sshll.u32 %s1013_s30, 4  ;;  %s196_s7 = int_to_ptr.vmem [resolvable:$true] %s195_s7 }
  0xb6   :  { %s549_s25 = sshll.u32 %s1274_s22, 4 }
  0xb7   :  { %s165_s2 = scalar_lea.hbm %s1250_s1, %s549_s25 }
  0xb8   :  { %s884_s14 = scalar_lea.hbm %s165_s2, 16  ;;  %p887_p10 = scmp.lt.u32.totalorder %s165_s2, %s1250_s1 }
  0xb9   :  { %p885_p12 = scmp.ne.s32.totalorder %s165_s2, %s884_s14  ;;  %p888_p13 = scmp.lt.u32.totalorder %s1107_s23, %s884_s14 }
  0xba   :  { %p890_p9 = scmp.lt.u32.totalorder %s884_s14, %s165_s2 }
  0xbb   :  { %p889_p11 = por %p888_p13, %p887_p10 }
  0xbd   :  { %p891_p2 = por %p890_p9, %p889_p11 }
  0xbf   :  { %p892_p3 = pnand %p891_p2, %p885_p12 }
  0xc1   :  { %895 = shalt.err (!%p892_p3)  }
  0xc2   :  { %s896_s15 = scalar_lea.vmem %s176_s16, 16  ;;  %p901_p4 = scmp.lt.s32.totalorder %s176_s16, %s1090_s9 }
  0xc3   :  { %p897_p8 = scmp.ne.s32.totalorder %s176_s16, %s896_s15  ;;  %p902_p5 = scmp.lt.s32.totalorder %s1116_s27, %s896_s15 }
  0xc5   :  { %p903_p6 = por %p902_p5, %p901_p4 }
  0xc7   :  { %p904_p7 = pnand %p903_p6, %p897_p8 }
  0xc9   :  { %907 = shalt.err (!%p904_p7)  }
  0xca   :  { %178 = dma.hbm_to_vmem [thread:$0]  %s165_s2, 16, %s176_s16, [#allocation3 + $0x5] }
  0xcb   :  { %s1276_s24 = smov (!%p551_p1, %s181_s24), 15  ;;  %p200_p0 = scmp.gt.s32.totalorder %s1195_s26, 0 }
  0xcc   :  { %s556_s4 = sshll.u32 %s1276_s24, 4 }
  0xcd   :  { %s185_s18 = scalar_lea.hbm %s1250_s1, %s556_s4 }
  0xce   :  { %s908_s19 = scalar_lea.hbm %s185_s18, 16  ;;  %p911_p10 = scmp.lt.u32.totalorder %s185_s18, %s1250_s1 }
  0xcf   :  { %p909_p12 = scmp.ne.s32.totalorder %s185_s18, %s908_s19  ;;  %p912_p13 = scmp.lt.u32.totalorder %s1107_s23, %s908_s19 }
  0xd0   :  { %p914_p9 = scmp.lt.u32.totalorder %s908_s19, %s185_s18 }
  0xd1   :  { %p913_p11 = por %p912_p13, %p911_p10 }
  0xd3   :  { %p915_p2 = por %p914_p9, %p913_p11 }
  0xd5   :  { %p916_p3 = pnand %p915_p2, %p909_p12 }
  0xd7   :  { %919 = shalt.err (!%p916_p3)  }
  0xd8   :  { %s920_s11 = scalar_lea.vmem %s196_s7, 16  ;;  %p925_p8 = scmp.lt.s32.totalorder %s196_s7, %s1090_s9 }
  0xd9   :  { %p921_p1 = scmp.ne.s32.totalorder %s196_s7, %s920_s11  ;;  %p926_p4 = scmp.lt.s32.totalorder %s1116_s27, %s920_s11 }
  0xdb   :  { %p927_p5 = por %p926_p4, %p925_p8 }
  0xdd   :  { %p928_p6 = pnand %p927_p5, %p921_p1 }
  0xdf   :  { %931 = shalt.err (!%p928_p6)  }
  0xe0   :  { %198 = dma.hbm_to_vmem [thread:$0]  %s185_s18, 16, %s196_s7, [#allocation3 + $0x6] }
  0xe1   :  { %s201_s16 = scalar_select %p200_p0, %s1195_s26, 0 }
  0xe2   :  { %p558_p7 = scmp.lt.s32.totalorder %s1195_s26, 15  ;;  %s1014_s12 = smov [#allocation2 + $0x7]  }
  0xe3   :  { %s215_s13 = sshll.u32 %s1014_s12, 4  ;;  %s216_s13 = int_to_ptr.vmem [resolvable:$true] %s215_s13 }
  0xe4   :  { %s1278_s16 = smov (!%p558_p7, %s201_s16), 15 }
  0xe5   :  { %s563_s22 = sshll.u32 %s1278_s16, 4 }
  0xe6   :  { %s205_s28 = scalar_lea.hbm %s1250_s1, %s563_s22 }
  0xe7   :  { %s932_s29 = scalar_lea.hbm %s205_s28, 16  ;;  %p935_p10 = scmp.lt.u32.totalorder %s205_s28, %s1250_s1 }
  0xe8   :  { %p933_p12 = scmp.ne.s32.totalorder %s205_s28, %s932_s29  ;;  %p936_p13 = scmp.lt.u32.totalorder %s1107_s23, %s932_s29 }
  0xe9   :  { %p938_p9 = scmp.lt.u32.totalorder %s932_s29, %s205_s28 }
  0xea   :  { %p937_p11 = por %p936_p13, %p935_p10 }
  0xec   :  { %p939_p0 = por %p938_p9, %p937_p11 }
  0xee   :  { %p940_p2 = pnand %p939_p0, %p933_p12 }
  0xf0   :  { %943 = shalt.err (!%p940_p2)  }
  0xf1   :  { %s944_s26 = scalar_lea.vmem %s216_s13, 16  ;;  %p949_p1 = scmp.lt.s32.totalorder %s216_s13, %s1090_s9 }
  0xf2   :  { %p945_p3 = scmp.ne.s32.totalorder %s216_s13, %s944_s26  ;;  %p950_p8 = scmp.lt.s32.totalorder %s1116_s27, %s944_s26 }
  0xf4   :  { %p951_p4 = por %p950_p8, %p949_p1 }
  0xf6   :  { %p952_p5 = pnand %p951_p4, %p945_p3 }
  0xf8   :  { %955 = shalt.err (!%p952_p5)  }
  0xf9   :  { %218 = dma.hbm_to_vmem [thread:$0]  %s205_s28, 16, %s216_s13, [#allocation3 + $0x7] }
  0xfa   :  { %984 = dma.done.wait [#allocation3], 16 }
  0xfb   :  { %985 = vsyncadd [#allocation3], 4294967280 }
  0xfc   :  { %986 = dma.done.wait [#allocation3 + $0x1], 16 }
  0xfd   :  { %987 = vsyncadd [#allocation3 + $0x1], 4294967280 }
  0xfe   :  { %988 = dma.done.wait [#allocation3 + $0x2], 16 }
  0xff   :  { %989 = vsyncadd [#allocation3 + $0x2], 4294967280 }
 0x100   :  { %990 = dma.done.wait [#allocation3 + $0x3], 16 }
 0x101   :  { %991 = vsyncadd [#allocation3 + $0x3], 4294967280 }
 0x102   :  { %992 = dma.done.wait [#allocation3 + $0x4], 16 }
 0x103   :  { %993 = vsyncadd [#allocation3 + $0x4], 4294967280 }
 0x104   :  { %994 = dma.done.wait [#allocation3 + $0x5], 16 }
 0x105   :  { %995 = vsyncadd [#allocation3 + $0x5], 4294967280 }
 0x106   :  { %996 = dma.done.wait [#allocation3 + $0x6], 16 }
 0x107   :  { %997 = vsyncadd [#allocation3 + $0x6], 4294967280 }
 0x108   :  { %998 = dma.done.wait [#allocation3 + $0x7], 16 }
 0x109   :  { %999 = vsyncadd [#allocation3 + $0x7], 4294967280  ;;  %v1015_v0 = vmov 0.0|0.0   ;;  %vm1016_vm0 = vmmov 0   ;;  %v1017_v1 = vmov 0.0   ;;  %v236_v2 = vld [vmem:[#allocation8] sm:$0xff] }
 0x10a   :  { %659 = vmatprep.subr.bf16.mxu0 %v1015_v0  ;;  %621 = vmatprep.mubr.msk.f32.mxu0 %vm1016_vm0, %v1017_v1  ;;  %v237_v3 = vld [vmem:[#allocation8 + $0x8] sm:$0xff]  ;;  %v238_v4 = vld [vmem:[#allocation8 + $0x10] sm:$0xff]  ;;  %v239_v6 = vld [vmem:[#allocation8 + $0x18] sm:$0xff]  ;;  %vm247_vm1 = vcmask 261120   ;;  %s1018_s7 = smov [#allocation11]  }
 0x10b   :  { %665 = vmatprep.subr.bf16.mxu1 %v1015_v0  ;;  %656 = vmatprep.mubr.msk.f32.mxu1 %vm1016_vm0, %v1017_v1  ;;  %v660_v5 = vpack.c.bf16 %v237_v3, %v236_v2  ;;  %v663_v7 = vpack.c.bf16 %v239_v6, %v238_v4  ;;  %v235_v8 = vld [vmem:[#allocation2] sm:$0xff]  ;;  %v327_v9 = vld [vmem:[#allocation9] sm:$0xff]  ;;  %v328_v10 = vld [vmem:[#allocation9 + $0x8] sm:$0xff]  ;;  %s427_s14 = sshll.u32 %s1018_s7, 4  ;;  %s428_s14 = int_to_ptr.vmem [resolvable:$true] %s427_s14 }
 0x10c   :  { %v666_v11 = vpack.c.bf16 %v328_v10, %v327_v9  ;;  %v329_v12 = vld [vmem:[#allocation9 + $0x10] sm:$0xff]  ;;  %v330_v13 = vld [vmem:[#allocation9 + $0x18] sm:$0xff]  ;;  %v331_v15 = vld [vmem:[#allocation9 + $0x20] sm:$0xff]  ;;  %p961_p7 = scmp.lt.s32.totalorder %s428_s14, %s428_s14 }
 0x10d   :  { %661 = vmatpush3.bf16.msra.mxu0 %v660_v5  ;;  %v669_v14 = vpack.c.bf16 %v330_v13, %v329_v12  ;;  %v332_v16 = vld [vmem:[#allocation9 + $0x28] sm:$0xff]  ;;  %v333_v18 = vld [vmem:[#allocation9 + $0x30] sm:$0xff]  ;;  %v334_v19 = vld [vmem:[#allocation9 + $0x38] sm:$0xff] }
 0x10e   :  { %662 = vmatprep.subr.bf16.mxu0 %v1015_v0  ;;  %667 = vmatpush3.bf16.msra.mxu1 %v666_v11  ;;  %v672_v17 = vpack.c.bf16 %v332_v16, %v331_v15  ;;  %v675_v20 = vpack.c.bf16 %v334_v19, %v333_v18  ;;  %v335_v21 = vld [vmem:[#allocation9 + $0x40] sm:$0xff]  ;;  %v336_v22 = vld [vmem:[#allocation9 + $0x48] sm:$0xff]  ;;  %v337_v24 = vld [vmem:[#allocation9 + $0x50] sm:$0xff] }
 0x10f   :  { %668 = vmatprep.subr.bf16.mxu1 %v1015_v0  ;;  %v678_v23 = vpack.c.bf16 %v336_v22, %v335_v21  ;;  %v338_v25 = vld [vmem:[#allocation9 + $0x58] sm:$0xff]  ;;  %v339_v27 = vld [vmem:[#allocation9 + $0x60] sm:$0xff]  ;;  %v340_v28 = vld [vmem:[#allocation9 + $0x68] sm:$0xff] }
 0x110   :  { %v681_v26 = vpack.c.bf16 %v338_v25, %v337_v24  ;;  %v684_v29 = vpack.c.bf16 %v340_v28, %v339_v27  ;;  %v341_v30 = vld [vmem:[#allocation9 + $0x70] sm:$0xff]  ;;  %v342_v31 = vld [vmem:[#allocation9 + $0x78] sm:$0xff] }
 0x111   :  { %664 = vmatpush3.bf16.msra.mxu0 %v663_v7  ;;  %v687_v32 = vpack.c.bf16 %v342_v31, %v341_v30  ;;  %v564_v33 = vld [vmem:[%s1252_s3] ss:$0 sm:$0xff]  ;;  %s956_s3 = scalar_lea.vmem %s428_s14, 128 }
 0x112   :  { %670 = vmatpush3.bf16.msra.mxu1 %v669_v14  ;;  %v566_v43 = vld [vmem:[%s1254_s5] ss:$0 sm:$0xff]  ;;  %p957_p6 = scmp.ne.s32.totalorder %s428_s14, %s956_s3  ;;  %p962_p12 = scmp.lt.s32.totalorder %s956_s3, %s956_s3 }
 0x113   :  { %671 = vmatprep.subr.bf16.mxu1 %v1015_v0 }
 0x114   :  { %622 = vmatmul.mubr.msk.f32.vlgmr.msra.gmra.mrb[0].mxu0 %vm247_vm1, %v235_v8  ;;  %p963_p10 = por %p962_p12, %p961_p7 }
 0x116   :  { %673 = vmatpush3.bf16.msra.mxu1 %v672_v17  ;;  %p964_p13 = pnand %p963_p10, %p957_p6 }
 0x117   :  { %674 = vmatprep.subr.bf16.mxu1 %v1015_v0 }
 0x11a   :  { %676 = vmatpush3.bf16.msra.mxu1 %v675_v20 }
 0x11b   :  { %677 = vmatprep.subr.bf16.mxu1 %v1015_v0 }
 0x11e   :  { %679 = vmatpush3.bf16.msra.mxu1 %v678_v23 }
 0x11f   :  { %680 = vmatprep.subr.bf16.mxu1 %v1015_v0 }
 0x122   :  { %682 = vmatpush3.bf16.msra.mxu1 %v681_v26 }
 0x123   :  { %683 = vmatprep.subr.bf16.mxu1 %v1015_v0 }
 0x126   :  { %685 = vmatpush3.bf16.msra.mxu1 %v684_v29 }
 0x127   :  { %686 = vmatprep.subr.bf16.mxu1 %v1015_v0 }
 0x12a   :  { %688 = vmatpush3.bf16.msra.mxu1 %v687_v32 }
 0x1e7   :  { %v317_v34 = vpop.f32.mrb[0].mxu0 }
 0x1e8   :  { %v318_v35 = vadd.f32 %v564_v33, %v317_v34  ;;  %v623_v36 = vpop.f32.mrb[1].mxu0 }
 0x1ea   :  { %v321_v37 = vsub.f32 0.0, %v318_v35 }
 0x1ec   :  { %v322_v38 = vmul.f32 1.442695, %v321_v37 }
 0x1ee   :  { %706 = vpow2.f32 %v322_v38 }
 0x1f8   :  { %v707_v39 = vpop.eup %706 }
 0x1f9   :  { %v324_v40 = vadd.f32 1.0, %v707_v39 }
 0x1fb   :  { %708 = vrcp.f32 %v324_v40 }
 0x205   :  { %v709_v41 = vpop.eup %708 }
 0x206   :  { %v326_v42 = vmul.f32 %v709_v41, %v318_v35 }
 0x208   :  { %657 = vmatmul.mubr.f32.vlgmr.msra.gmra.mrb[0].mxu1 %v326_v42 }
 0x2db   :  { %v416_v44 = vpop.f32.mrb[0].mxu1 }
 0x2dc   :  { %v417_v45 = vadd.f32 %v566_v43, %v416_v44  ;;  %v658_v46 = vpop.f32.mrb[1].mxu1 }
 0x2de   :  { %420 = vst [vmem:[#allocation11] sm:$0xff] %v417_v45 }
 0x2df   :  { %967 = shalt.err (!%p964_p13)
}
 0x2e0   :  { %s968_s15 = scalar_lea.hbm %s1255_s6, 128 }
 0x2e1   :  { %p969_p11 = scmp.ne.s32.totalorder %s1255_s6, %s968_s15  ;;  %p972_p9 = scmp.lt.u32.totalorder %s968_s15, %s1255_s6 }
 0x2e3   :  { %p974_p0 = pnand %p972_p9, %p969_p11 }
 0x2e5   :  { %977 = shalt.err (!%p974_p0)
}
 0x2e6   :  { %430 = dma.vmem_to_hbm [thread:$0]  %s428_s14, 128, %s1255_s6, [#allocation6]  }
 0x2e7   :  { %1000 = dma.done.wait [#allocation6], 128  }
 0x2e8   :  { %1001 = vsyncadd [#allocation6], 4294967168 }
 0x2e9   :  { %434 = vsyncpa [#allocation5], 1 }
 0x2ea   :  { %435 = vsyncpa [#allocation10], 1 }
 0x2eb   :  { %436 = vsyncpa [#allocation6], 1 }
 0x2ec   :  { %437 = vsyncpa [#allocation7], 1 }
 0x2ed   :  { %438 = vsyncmov [#allocation3] }
 0x2f0   :  { %s439_s20 = vpop.sfrf %438 }
 0x2f1   :  { %p567_p2 = scmp.ne.s32.totalorder %s439_s20, 0 }
 0x2f3   :  { %443 = shalt.err (%p567_p2)  }
 0x2f4   :  { %445 = vsyncmov [#allocation3 + $0x1] }
 0x2f7   :  { %s446_s21 = vpop.sfrf %445 }
 0x2f8   :  { %p568_p3 = scmp.ne.s32.totalorder %s446_s21, 0 }
 0x2fa   :  { %450 = shalt.err (%p568_p3)  }
 0x2fb   :  { %452 = vsyncmov [#allocation3 + $0x2] }
 0x2fe   :  { %s453_s11 = vpop.sfrf %452 }
 0x2ff   :  { %p569_p1 = scmp.ne.s32.totalorder %s453_s11, 0 }
 0x301   :  { %457 = shalt.err (%p569_p1)  }
 0x302   :  { %459 = vsyncmov [#allocation3 + $0x3] }
 0x305   :  { %s460_s6 = vpop.sfrf %459 }
 0x306   :  { %p570_p8 = scmp.ne.s32.totalorder %s460_s6, 0 }
 0x308   :  { %464 = shalt.err (%p570_p8)  }
 0x309   :  { %466 = vsyncmov [#allocation3 + $0x4] }
 0x30c   :  { %s467_s16 = vpop.sfrf %466 }
 0x30d   :  { %p571_p4 = scmp.ne.s32.totalorder %s467_s16, 0 }
 0x30f   :  { %471 = shalt.err (%p571_p4)  }
 0x310   :  { %473 = vsyncmov [#allocation3 + $0x5] }
 0x313   :  { %s474_s12 = vpop.sfrf %473 }
 0x314   :  { %p572_p5 = scmp.ne.s32.totalorder %s474_s12, 0 }
 0x316   :  { %478 = shalt.err (%p572_p5)  }
 0x317   :  { %480 = vsyncmov [#allocation3 + $0x6] }
 0x31a   :  { %s481_s13 = vpop.sfrf %480 }
 0x31b   :  { %p573_p6 = scmp.ne.s32.totalorder %s481_s13, 0 }
 0x31d   :  { %485 = shalt.err (%p573_p6)  }
 0x31e   :  { %487 = vsyncmov [#allocation3 + $0x7] }
 0x321   :  { %s488_s22 = vpop.sfrf %487 }
 0x322   :  { %p574_p7 = scmp.ne.s32.totalorder %s488_s22, 0 }
 0x324   :  { %492 = shalt.err (%p574_p7)  }

</bundles_post_ra>
